<compile_context>
chip_gen: v6e
topology: v6e:2x2x1
jax: 0.10.0
libtpu: 0.0.40
codegen_flags: <defaults>
</compile_context>

<pallas_src>
import math
import functools

import jax
import jax.numpy as jnp
from jax.experimental import pallas as pl
from jax.experimental.pallas import tpu as pltpu


def _round_up(n, m):
    return ((n + m - 1) // m) * m


def _ensemble_tempscal_kernel(x_ref, inv_temp_ref, norm_w_ref, out_ref, *,
                              scalarnum, num_classes):
    x = x_ref[...].astype(jnp.float32)                       # (bm, C) f32

    # Single row max; since inv_temp >= 0 it bounds every scaled row too.
    m = jnp.max(x, axis=1, keepdims=True)                    # (bm, 1)  XLU
    centered = x - m                                         # (bm, C) <= 0

    use_mxu_rowsum = (num_classes % 128 == 0)
    if use_mxu_rowsum:
        # Offload the per-temperature cross-lane reduction to the idle MXU.
        ones_col = jnp.ones((num_classes, 1), jnp.float32)   # hoisted constant

        def row_sum(e):
            return jnp.dot(e, ones_col, preferred_element_type=jnp.float32)
    else:
        # Ragged lane width: Mosaic masks the logical-width reduction exactly.
        def row_sum(e):
            return jnp.sum(e, axis=1, keepdims=True)

    # Peel s = 0: initialize acc directly (no zero store + add).
    t0 = inv_temp_ref[0]                                     # SMEM scalar, >= 0
    w0 = norm_w_ref[0]
    e = jnp.exp(centered * t0)                               # EUP, values in (0, 1]
    acc = e * (w0 * pl.reciprocal(row_sum(e), approx=False))

    # S is small and static -> unrolled Python loop over remaining temperatures.
    for s in range(1, scalarnum):
        t = inv_temp_ref[s]
        w = norm_w_ref[s]
        e = jnp.exp(centered * t)
        acc = acc + e * (w * pl.reciprocal(row_sum(e), approx=False))

    out_ref[...] = acc.astype(out_ref.dtype)


def ensemble_tempscal(x, para, weight, *, block_rows=1024):
    """x: (B, C) logits.  para, weight: (1, 1, S) parameters (as in the module)."""
    B, C = x.shape
    S = para.shape[-1]

    # Tiny (S,) parameter prep once in the wrapper, passed via SMEM.
    inv_temp = jnp.abs(para).reshape(S).astype(jnp.float32)      # (S,) >= 0
    w_abs = jnp.abs(weight).reshape(S).astype(jnp.float32)
    norm_w = w_abs / jnp.sum(w_abs)                              # (S,)

    # --- batch tile sizing -------------------------------------------------
    # Physical lane footprint per row is round_up(C, 128) lanes.
    c_pad = _round_up(C, 128)
    in_itemsize = jnp.dtype(x.dtype).itemsize
    # Honest per-row VMEM footprint: double-buffered input (native dtype),
    # double-buffered f32 output, ~4 f32 full-tile temporaries (x_f32,
    # centered, e, acc).
    bytes_per_row = c_pad * (2 * in_itemsize + 2 * 4 + 4 * 4)
    tile_budget = 24 << 20                                       # ~24 MiB working set
    vmem_rows = max(8, (tile_budget // bytes_per_row) // 8 * 8)

    if B <= 8:
        bm = B                       # full batch dim -> single block, any size ok
    else:
        bm = min(block_rows, vmem_rows, 1024, _round_up(B, 8))
        # Keep >= ~4 grid steps where possible so the "parallel" batch axis can
        # shard across v7x's two TensorCores (harmless on single-TC v5e/v6e).
        mc_cap = max(8, _round_up(pl.cdiv(B, 4), 8))
        bm = min(bm, mc_cap)
        bm = max(8, (bm // 8) * 8)

    grid = (pl.cdiv(B, bm),)

    kernel = functools.partial(
        _ensemble_tempscal_kernel, scalarnum=S, num_classes=C)

    out = pl.pallas_call(
        kernel,
        out_shape=jax.ShapeDtypeStruct((B, C), x.dtype),
        grid_spec=pltpu.PrefetchScalarGridSpec(
            num_scalar_prefetch=0,
            grid=grid,
            in_specs=[
                pl.BlockSpec((bm, C), lambda i: (i, 0)),
                pl.BlockSpec(memory_space=pltpu.MemorySpace.SMEM),
                pl.BlockSpec(memory_space=pltpu.MemorySpace.SMEM),
            ],
            out_specs=pl.BlockSpec((bm, C), lambda i: (i, 0)),
        ),
        compiler_params=pltpu.CompilerParams(
            dimension_semantics=("parallel",),
            vmem_limit_bytes=48 << 20),
    )(x, inv_temp, norm_w)

    return out


def _reference(x, para, weight):
    """Pure-JAX reference mirroring the PyTorch forward."""
    x = x.astype(jnp.float32)
    logp = x - jax.scipy.special.logsumexp(x, axis=1, keepdims=True)
    inv_temp = jnp.abs(para)                                   # (1, 1, S)
    x_calib = logp[..., None] * inv_temp                       # (B, C, S)
    norm_w = jnp.abs(weight) / jnp.sum(jnp.abs(weight))        # (1, 1, S)
    return jnp.sum(jax.nn.softmax(x_calib, axis=1) * norm_w, axis=2)


if __name__ == "__main__":
    key = jax.random.PRNGKey(0)
    kx, kp, kw, kx2, kx3 = jax.random.split(key, 5)

    # Shapes consistent with the module: (batch, num_classes) logits, S temps.
    B, C, S = 8, 16, 4
    x = jax.random.normal(kx, (B, C), dtype=jnp.float32) * 3.0

    # Deterministic kaiming_uniform_-style init for (1, 1, S) params:
    # fan_in = S, gain = sqrt(2/(1+5)) -> bound = sqrt(1/S).
    bound = math.sqrt(1.0 / S)
    para = jax.random.uniform(kp, (1, 1, S), minval=-bound, maxval=bound,
                              dtype=jnp.float32)
    weight = jax.random.uniform(kw, (1, 1, S), minval=-bound, maxval=bound,
                                dtype=jnp.float32)

    # Case 1: tiny f32, single block, ragged lane width (C=16).
    out = jax.block_until_ready(ensemble_tempscal(x, para, weight))
    ref = _reference(x, para, weight)
    assert out.shape == (B, C)
    assert jnp.allclose(out, ref, atol=1e-5, rtol=1e-5), "mismatch (case 1)"

    # Case 2: ragged batch (B=37), ragged classes (C=50), multi-step grid.
    B2, C2 = 37, 50
    x2 = jax.random.normal(kx2, (B2, C2), dtype=jnp.float32) * 2.0
    out2 = jax.block_until_ready(
        ensemble_tempscal(x2, para, weight, block_rows=16))
    ref2 = _reference(x2, para, weight)
    assert out2.shape == (B2, C2)
    assert jnp.allclose(out2, ref2, atol=1e-5, rtol=1e-5), "mismatch (case 2)"

    # Case 3: bf16 input streamed in native dtype, C % 128 == 0 -> MXU row-sum
    # path, ragged batch tail.
    B3, C3 = 37, 128
    x3 = (jax.random.normal(kx3, (B3, C3), dtype=jnp.float32) * 2.0
          ).astype(jnp.bfloat16)
    out3 = jax.block_until_ready(
        ensemble_tempscal(x3, para, weight, block_rows=16))
    ref3 = _reference(x3, para, weight)
    assert out3.shape == (B3, C3)
    assert jnp.allclose(out3.astype(jnp.float32), ref3, atol=1e-2), \
        "mismatch (case 3, bf16)"

    print("KERNEL_OK")
</pallas_src>

<mosaic_0001>
module attributes {stable_mosaic.version = 11 : i64} {
  func.func @_ensemble_tempscal_kernel(%arg0: i32, %arg1: memref<8x16xf32, #tpu.memory_space<vmem>>, %arg2: memref<4xf32, #tpu.memory_space<smem>>, %arg3: memref<4xf32, #tpu.memory_space<smem>>, %arg4: memref<8x16xf32, #tpu.memory_space<vmem>>) attributes {dimension_semantics = [#tpu.dimension_semantics<parallel>], iteration_bounds = array<i64: 1>, scalar_prefetch = 0 : i64, scratch_operands = 0 : i64, tpu.core_type = #tpu.core_type<tc>, window_params = [{transform_indices = @transform_0, window_bounds = array<i64: 8, 16>}, {transform_indices = @transform_1, window_bounds = array<i64: 4>}, {transform_indices = @transform_2, window_bounds = array<i64: 4>}, {transform_indices = @transform_3, window_bounds = array<i64: 8, 16>}]} {
    %c0 = arith.constant 0 : index
    %c0_0 = arith.constant 0 : index
    %0 = vector.load %arg1[%c0, %c0_0] : memref<8x16xf32, #tpu.memory_space<vmem>>, vector<8x16xf32>
    %cst = arith.constant dense<0xFF800000> : vector<8xf32>
    %1 = vector.multi_reduction <maximumf>, %0, %cst [1] : vector<8x16xf32> to vector<8xf32>
    %2 = vector.shape_cast %1 : vector<8xf32> to vector<8x1xf32>
    %3 = vector.broadcast %2 : vector<8x1xf32> to vector<8x16xf32>
    %4 = arith.subf %0, %3 : vector<8x16xf32>
    %c0_1 = arith.constant 0 : index
    %5 = memref.load %arg2[%c0_1] : memref<4xf32, #tpu.memory_space<smem>>
    %c0_2 = arith.constant 0 : index
    %6 = memref.load %arg3[%c0_2] : memref<4xf32, #tpu.memory_space<smem>>
    %7 = vector.broadcast %5 : f32 to vector<8x16xf32>
    %8 = arith.mulf %4, %7 : vector<8x16xf32>
    %9 = math.exp %8 : vector<8x16xf32>
    %cst_3 = arith.constant dense<0.000000e+00> : vector<8xf32>
    %10 = vector.multi_reduction <add>, %9, %cst_3 [1] : vector<8x16xf32> to vector<8xf32>
    %11 = vector.shape_cast %10 : vector<8xf32> to vector<8x1xf32>
    %12 = tpu.reciprocal %11 : vector<8x1xf32> -> vector<8x1xf32>
    %13 = vector.broadcast %6 : f32 to vector<8x1xf32>
    %14 = arith.mulf %13, %12 : vector<8x1xf32>
    %15 = vector.broadcast %14 : vector<8x1xf32> to vector<8x16xf32>
    %16 = arith.mulf %9, %15 : vector<8x16xf32>
    %c1 = arith.constant 1 : index
    %17 = memref.load %arg2[%c1] : memref<4xf32, #tpu.memory_space<smem>>
    %c1_4 = arith.constant 1 : index
    %18 = memref.load %arg3[%c1_4] : memref<4xf32, #tpu.memory_space<smem>>
    %19 = vector.broadcast %17 : f32 to vector<8x16xf32>
    %20 = arith.mulf %4, %19 : vector<8x16xf32>
    %21 = math.exp %20 : vector<8x16xf32>
    %cst_5 = arith.constant dense<0.000000e+00> : vector<8xf32>
    %22 = vector.multi_reduction <add>, %21, %cst_5 [1] : vector<8x16xf32> to vector<8xf32>
    %23 = vector.shape_cast %22 : vector<8xf32> to vector<8x1xf32>
    %24 = tpu.reciprocal %23 : vector<8x1xf32> -> vector<8x1xf32>
    %25 = vector.broadcast %18 : f32 to vector<8x1xf32>
    %26 = arith.mulf %25, %24 : vector<8x1xf32>
    %27 = vector.broadcast %26 : vector<8x1xf32> to vector<8x16xf32>
    %28 = arith.mulf %21, %27 : vector<8x16xf32>
    %29 = arith.addf %16, %28 : vector<8x16xf32>
    %c2 = arith.constant 2 : index
    %30 = memref.load %arg2[%c2] : memref<4xf32, #tpu.memory_space<smem>>
    %c2_6 = arith.constant 2 : index
    %31 = memref.load %arg3[%c2_6] : memref<4xf32, #tpu.memory_space<smem>>
    %32 = vector.broadcast %30 : f32 to vector<8x16xf32>
    %33 = arith.mulf %4, %32 : vector<8x16xf32>
    %34 = math.exp %33 : vector<8x16xf32>
    %cst_7 = arith.constant dense<0.000000e+00> : vector<8xf32>
    %35 = vector.multi_reduction <add>, %34, %cst_7 [1] : vector<8x16xf32> to vector<8xf32>
    %36 = vector.shape_cast %35 : vector<8xf32> to vector<8x1xf32>
    %37 = tpu.reciprocal %36 : vector<8x1xf32> -> vector<8x1xf32>
    %38 = vector.broadcast %31 : f32 to vector<8x1xf32>
    %39 = arith.mulf %38, %37 : vector<8x1xf32>
    %40 = vector.broadcast %39 : vector<8x1xf32> to vector<8x16xf32>
    %41 = arith.mulf %34, %40 : vector<8x16xf32>
    %42 = arith.addf %29, %41 : vector<8x16xf32>
    %c3 = arith.constant 3 : index
    %43 = memref.load %arg2[%c3] : memref<4xf32, #tpu.memory_space<smem>>
    %c3_8 = arith.constant 3 : index
    %44 = memref.load %arg3[%c3_8] : memref<4xf32, #tpu.memory_space<smem>>
    %45 = vector.broadcast %43 : f32 to vector<8x16xf32>
    %46 = arith.mulf %4, %45 : vector<8x16xf32>
    %47 = math.exp %46 : vector<8x16xf32>
    %cst_9 = arith.constant dense<0.000000e+00> : vector<8xf32>
    %48 = vector.multi_reduction <add>, %47, %cst_9 [1] : vector<8x16xf32> to vector<8xf32>
    %49 = vector.shape_cast %48 : vector<8xf32> to vector<8x1xf32>
    %50 = tpu.reciprocal %49 : vector<8x1xf32> -> vector<8x1xf32>
    %51 = vector.broadcast %44 : f32 to vector<8x1xf32>
    %52 = arith.mulf %51, %50 : vector<8x1xf32>
    %53 = vector.broadcast %52 : vector<8x1xf32> to vector<8x16xf32>
    %54 = arith.mulf %47, %53 : vector<8x16xf32>
    %55 = arith.addf %42, %54 : vector<8x16xf32>
    %c0_10 = arith.constant 0 : index
    %c0_11 = arith.constant 0 : index
    %56 = vector.load %arg4[%c0_10, %c0_11] : memref<8x16xf32, #tpu.memory_space<vmem>>, vector<8x16xf32>
    tpu.vector_store %arg4[%c0_10, %c0_11], %55 {strides = array<i32>} : memref<8x16xf32, #tpu.memory_space<vmem>>, vector<8x16xf32>,
    return
  }
  func.func @transform_0(%arg0: i32) -> (i32, i32) {
    %c0_i32 = arith.constant 0 : i32
    %c0_i32_0 = arith.constant 0 : i32
    return %arg0, %c0_i32 : i32, i32
  }
  func.func @transform_1(%arg0: i32) -> i32 {
    %c0_i32 = arith.constant 0 : i32
    %c0_i32_0 = arith.constant 0 : i32
    return %c0_i32 : i32
  }
  func.func @transform_2(%arg0: i32) -> i32 {
    %c0_i32 = arith.constant 0 : i32
    %c0_i32_0 = arith.constant 0 : i32
    return %c0_i32 : i32
  }
  func.func @transform_3(%arg0: i32) -> (i32, i32) {
    %c0_i32 = arith.constant 0 : i32
    %c0_i32_0 = arith.constant 0 : i32
    return %arg0, %c0_i32 : i32, i32
  }
}

</mosaic_0001>

<bundles_post_ra>
// kernel: tpu_custom_call.1
= control target key start
LH: loop header
LB: loop body
LE: loop exit
PB: predicated region body
PF: predicated region fallthrough
CT: control target
= control target key end

     0   :  { %8 = vsyncpa [#allocation3], 0  ;;  %s271_s0 = inlined_call_operand.hbm [shape: f32[8,16], index: 0, kind: input, shape index: {}]   ;;  %s272_s1 = inlined_call_operand.vmem [shape: f32[4], index: 1, kind: input, shape index: {}]   ;;  %s273_s2 = inlined_call_operand.vmem [shape: f32[4], index: 2, kind: input, shape index: {}]   ;;  %s274_s3 = inlined_call_operand.hbm [shape: f32[8,16], index: 3, kind: output, shape index: {}]  }
   0x1   :  { %9 = vsyncpa [#allocation5], 0 }
   0x2   :  { %10 = vsyncpa [#allocation8], 0 }
   0x3   :  { %11 = vsyncpa [#allocation4], 0  ;;  %s28_s14 = sshll.u32 %s272_s1, 4  ;;  %s229_s15 = smov [#allocation2]   ;;  %s29_s14 = int_to_ptr.vmem [resolvable:$true] %s28_s14 }
   0x4   :  { %s18_s16 = sshll.u32 %s229_s15, 4  ;;  %s19_s16 = int_to_ptr.vmem [resolvable:$true] %s18_s16 }
   0x5   :  { %s165_s17 = scalar_lea.vmem %s19_s16, 128  ;;  %p170_p1 = scmp.lt.s32.totalorder %s19_s16, %s19_s16 }
   0x6   :  { %p166_p0 = scmp.ne.s32.totalorder %s19_s16, %s165_s17  ;;  %p171_p2 = scmp.lt.s32.totalorder %s165_s17, %s165_s17 }
   0x8   :  { %p172_p3 = por %p171_p2, %p170_p1 }
   0xa   :  { %p173_p4 = pnand %p172_p3, %p166_p0 }
   0xc   :  { %176 = shalt.err (!%p173_p4)
}
   0xd   :  { %21 = dma.hbm_to_vmem [thread:$0]  %s271_s0, 128, %s19_s16, [#allocation3]  }
   0xe   :  { %s177_s20 = scalar_lea.vmem %s29_s14, 16  ;;  %p182_p6 = scmp.lt.s32.totalorder %s29_s14, %s29_s14 }
   0xf   :  { %p178_p5 = scmp.ne.s32.totalorder %s29_s14, %s177_s20  ;;  %p183_p7 = scmp.lt.s32.totalorder %s177_s20, %s177_s20 }
  0x11   :  { %p184_p8 = por %p183_p7, %p182_p6 }
  0x13   :  { %p185_p9 = pnand %p184_p8, %p178_p5 }
  0x15   :  { %188 = shalt.err (!%p185_p9)
}
  0x16   :  { %s230_s1 = smov [#allocation6]   ;;  %s38_s23 = sshll.u32 %s273_s2, 4  ;;  %s39_s23 = int_to_ptr.vmem [resolvable:$true] %s38_s23 }
  0x17   :  { %31 = dma.vmem_to_smem %s29_s14, 16, %s230_s1, [#allocation5]  }
  0x18   :  { %s189_s24 = scalar_lea.vmem %s39_s23, 16  ;;  %p194_p11 = scmp.lt.s32.totalorder %s39_s23, %s39_s23 }
  0x19   :  { %p190_p10 = scmp.ne.s32.totalorder %s39_s23, %s189_s24  ;;  %p195_p12 = scmp.lt.s32.totalorder %s189_s24, %s189_s24 }
  0x1b   :  { %p196_p13 = por %p195_p12, %p194_p11 }
  0x1d   :  { %p197_p0 = pnand %p196_p13, %p190_p10 }
  0x1f   :  { %200 = shalt.err (!%p197_p0)
}
  0x20   :  { %s231_s0 = smov [#allocation7]  }
  0x21   :  { %41 = dma.vmem_to_smem %s39_s23, 16, %s231_s0, [#allocation8]  }
  0x22   :  { %221 = dma.done.wait [#allocation3], 128  }
  0x23   :  { %222 = vsyncadd [#allocation3], 4294967168 }
  0x24   :  { %223 = dma.done.wait [#allocation5], 16  }
  0x25   :  { %224 = vsyncadd [#allocation5], 4294967280 }
  0x26   :  { %225 = dma.done.wait [#allocation8], 16  }
  0x27   :  { %226 = vsyncadd [#allocation8], 4294967280 }
  0x28   :  { %51 = sfence }
  0x29   :  { %v52_v0 = vld [vmem:[#allocation2] sm:$0xff]  ;;  %vm53_vm0 = vcmask 130048   ;;  %s58_s2 = sld [smem:[#allocation6]]  ;;  %s232_s5 = smov [#allocation9]  }
  0x2a   :  { %v54_v1 = vsel %vm53_vm0, %v52_v0, -inf  ;;  %s131_s25 = sld [smem:[#allocation6 + $0x1]]  ;;  %s120_s6 = sshll.u32 %s232_s5, 4  ;;  %s121_s6 = int_to_ptr.vmem [resolvable:$true] %s120_s6 }
  0x2b   :  { %55 = vmax.xlane.f32.xlu0 %v54_v1  ;;  %s133_s26 = sld [smem:[#allocation6 + $0x2]]  ;;  %s201_s7 = scalar_lea.vmem %s121_s6, 128 }
  0x2c   :  { %s135_s27 = sld [smem:[#allocation6 + $0x3]]  ;;  %p202_p1 = scmp.ne.s32.totalorder %s121_s6, %s201_s7 }
  0x2d   :  { %s59_s28 = sld [smem:[#allocation7]]  ;;  %p206_p2 = scmp.lt.s32.totalorder %s121_s6, %s121_s6 }
  0x2e   :  { %s132_s29 = sld [smem:[#allocation7 + $0x1]]  ;;  %p207_p3 = scmp.lt.s32.totalorder %s201_s7, %s201_s7 }
  0x2f   :  { %v60_v2 = vstv %s58_s2  ;;  %s134_s30 = sld [smem:[#allocation7 + $0x2]] }
  0x30   :  { %v73_v3 = vstv %s131_s25  ;;  %s136_s4 = sld [smem:[#allocation7 + $0x3]]  ;;  %p208_p4 = por %p207_p3, %p206_p2 }
  0x31   :  { %v87_v4 = vstv %s133_s26 }
  0x32   :  { %v101_v5 = vstv %s135_s27  ;;  %p209_p5 = pnand %p208_p4, %p202_p1 }
  0x33   :  { %v68_v28 = vstv %s59_s28 }
  0x34   :  { %v81_v29 = vstv %s132_s29 }
  0x35   :  { %v95_v34 = vstv %s134_s30 }
  0x36   :  { %v109_v35 = vstv %s136_s4 }
  0xb4   :  { %v56_v6 = vpop.xlane.xlu0 %55 }
  0xb5   :  { %v57_v7 = vsub.f32 %v52_v0, %v56_v6 }
  0xb7   :  { %v61_v8 = vmul.f32 %v60_v2, %v57_v7  ;;  %v74_v9 = vmul.f32 %v73_v3, %v57_v7  ;;  %v88_v10 = vmul.f32 %v87_v4, %v57_v7  ;;  %v102_v11 = vmul.f32 %v101_v5, %v57_v7 }
  0xb9   :  { %v62_v12 = vmul.f32 1.442695, %v61_v8  ;;  %v75_v13 = vmul.f32 1.442695, %v74_v9  ;;  %v89_v14 = vmul.f32 1.442695, %v88_v10 }
  0xba   :  { %v103_v15 = vmul.f32 1.442695, %v102_v11 }
  0xbb   :  { %141 = vpow2.f32 %v62_v12 }
  0xbc   :  { %143 = vpow2.f32 %v75_v13 }
  0xbd   :  { %145 = vpow2.f32 %v89_v14 }
  0xbe   :  { %147 = vpow2.f32 %v103_v15 }
  0xc8   :  { %v142_v16 = vpop.eup %141 }
  0xc9   :  { %v144_v17 = vpop.eup %143  ;;  %v64_v18 = vsel %vm53_vm0, %v142_v16, 0.0 }
  0xca   :  { %v146_v19 = vpop.eup %145  ;;  %v77_v20 = vsel %vm53_vm0, %v144_v17, 0.0  ;;  %65 = vadd.xlane.f32.xlu0 %v64_v18 }
  0xcb   :  { %v148_v21 = vpop.eup %147  ;;  %78 = vadd.xlane.f32.xlu1 %v77_v20  ;;  %v91_v23 = vsel %vm53_vm0, %v146_v19, 0.0 }
  0xcc   :  { %v105_v22 = vsel %vm53_vm0, %v148_v21, 0.0 }
  0xce   :  { %106 = vadd.xlane.f32.xlu0 %v105_v22 }
  0xcf   :  { %92 = vadd.xlane.f32.xlu1 %v91_v23 }
 0x153   :  { %v66_v24 = vpop.xlane.xlu0 %65 }
 0x154   :  { %v79_v25 = vpop.xlane.xlu1 %78  ;;  %149 = vrcp.f32 %v66_v24 }
 0x155   :  { %151 = vrcp.f32 %v79_v25 }
 0x157   :  { %v107_v26 = vpop.xlane.xlu0 %106 }
 0x158   :  { %v93_v27 = vpop.xlane.xlu1 %92  ;;  %153 = vrcp.f32 %v107_v26 }
 0x159   :  { %155 = vrcp.f32 %v93_v27 }
 0x161   :  { %v150_v30 = vpop.eup %149 }
 0x162   :  { %v152_v31 = vpop.eup %151  ;;  %v69_v32 = vmul.f32 %v150_v30, %v68_v28 }
 0x163   :  { %v82_v33 = vmul.f32 %v152_v31, %v81_v29 }
 0x164   :  { %v70_v37 = vmul.f32 %v142_v16, %v69_v32 }
 0x165   :  { %v154_v36 = vpop.eup %153  ;;  %v83_v38 = vmul.f32 %v144_v17, %v82_v33 }
 0x166   :  { %v156_v39 = vpop.eup %155  ;;  %v110_v41 = vmul.f32 %v154_v36, %v109_v35 }
 0x167   :  { %v96_v40 = vmul.f32 %v156_v39, %v95_v34  ;;  %v84_v42 = vadd.f32 %v83_v38, %v70_v37 }
 0x168   :  { %v111_v45 = vmul.f32 %v148_v21, %v110_v41 }
 0x169   :  { %v97_v43 = vmul.f32 %v146_v19, %v96_v40 }
 0x16b   :  { %v98_v44 = vadd.f32 %v97_v43, %v84_v42 }
 0x16d   :  { %v112_v46 = vadd.f32 %v111_v45, %v98_v44 }
 0x16f   :  { %113 = vst.msk [vmem:[#allocation9] sm:$0xff] %vm53_vm0, %v112_v46 }
 0x170   :  { %212 = shalt.err (!%p209_p5)
}
 0x171   :  { %123 = dma.vmem_to_hbm [thread:$0]  %s121_s6, 128, %s274_s3, [#allocation4]  }
 0x172   :  { %227 = dma.done.wait [#allocation4], 128  }
 0x173   :  { %228 = vsyncadd [#allocation4], 4294967168 }
 0x174   :  { %127 = vsyncpa [#allocation3], 1 }
 0x175   :  { %128 = vsyncpa [#allocation4], 1 }
 0x176   :  { %129 = vsyncpa [#allocation5], 1 }
 0x177   :  { %130 = vsyncpa [#allocation8], 1 }

</bundles_post_ra>
